<compile_context>
chip_gen: v6e
topology: v6e:2x2x1
jax: 0.10.0
libtpu: 0.0.40
codegen_flags: <defaults>
</compile_context>

<pallas_src>
import functools

import jax
import jax.numpy as jnp
from jax.experimental import pallas as pl
from jax.experimental.pallas import tpu as pltpu


# --------------------------------------------------------------------------
# Kernel
# --------------------------------------------------------------------------
def _rmsnorm_kernel(x_ref, scale_ref, *rest, eps, d, partial_size, use_bias,
                    approx_reciprocal, low_precision):
    # x_ref:     (tm, d) tile of rows
    # scale_ref: (1, d)  broadcast scale
    # offset_ref (1, d)  only present when use_bias=True
    if use_bias:
        offset_ref, o_ref = rest
    else:
        (o_ref,) = rest

    x = x_ref[...]
    xf = x.astype(jnp.float32)

    if partial_size is None or partial_size == d:
        # Full RMSNorm: norm over all d elements.
        sq = xf * xf
        d_x = d if partial_size is None else partial_size
    else:
        # Partial RMSNorm: norm over the first `partial_size` elements only.
        # (1, d) lane mask broadcast in the where -- no (tm, d) int32 temp,
        # reduction stays on full (8,128) vregs.
        col = jax.lax.broadcasted_iota(jnp.int32, (1, d), 1)
        sq = jnp.where(col < partial_size, xf * xf, 0.0)
        d_x = partial_size

    sq_sum = jnp.sum(sq, axis=-1, keepdims=True)          # (tm, 1) f32
    rms_x = jnp.sqrt(sq_sum) * (float(d_x) ** -0.5)       # ||x||_2 * d^{-1/2}
    # NOTE: eps is added to rms (not to variance) -- matches RealRMSNorm.
    inv = pl.reciprocal(rms_x + eps, approx=approx_reciprocal)  # (tm, 1) f32

    if low_precision:
        # Keep the elementwise normalize/scale/bias math in the input dtype
        # (bf16 VPU on v6e/v7x); only the reduction above was in f32.
        inv = inv.astype(x.dtype)
        out = x * inv * scale_ref[...]
        if use_bias:
            out = out + offset_ref[...]
    else:
        out = xf * inv * scale_ref[...].astype(jnp.float32)
        if use_bias:
            out = out + offset_ref[...].astype(jnp.float32)

    o_ref[...] = out.astype(o_ref.dtype)


# --------------------------------------------------------------------------
# Hardware / tiling helpers
# --------------------------------------------------------------------------
def _chip_info():
    """(tensorcores_per_chip, has_bf16_vpu) -- best effort, safe defaults."""
    kind = ""
    try:
        kind = jax.devices()[0].device_kind.lower()
    except Exception:
        pass
    multi_tc = ("v7" in kind) or ("7x" in kind)
    bf16_vpu = ("v6" in kind) or ("v7" in kind) or ("7x" in kind)
    return (2 if multi_tc else 1), bf16_vpu


def _round_up(x, m):
    return ((x + m - 1) // m) * m


def _pick_tile_rows(rows, d, itemsize, num_tc, target_tile_bytes):
    """Row tile targeting ~target_tile_bytes of x per buffer, multiple of 8."""
    tm = target_tile_bytes // max(d * itemsize, 1)
    tm = max(8, min(1024, tm))
    tm = min(tm, _round_up(rows, 8))
    tm = max(8, (tm // 8) * 8)

    # On multi-TensorCore chips (v7x) round the step count up to a multiple of
    # the TC count so the "parallel" grid axis splits evenly. No cap on
    # single-TC chips (v5e/v6e) -- fewer steps = less per-step overhead there.
    if num_tc > 1 and rows > 8:
        n = pl.cdiv(rows, tm)
        n_even = max(num_tc, _round_up(n, num_tc))
        tm_even = max(8, _round_up(pl.cdiv(rows, n_even), 8))
        tm = max(8, min(tm, tm_even))
    return tm


# --------------------------------------------------------------------------
# Wrapper
# --------------------------------------------------------------------------
def rmsnorm(x, scale, offset=None, *, p=-1.0, eps=1e-8, block_rows=None,
            approx_reciprocal=None, target_tile_bytes=2 << 20):
    """Pallas RMSNorm over the last axis of `x`.

    x:      (..., d)
    scale:  (d,)
    offset: (d,) or None  (bias term)
    p:      partial RMSNorm fraction in [0, 1]; disabled otherwise.
    """
    d = x.shape[-1]
    lead_shape = x.shape[:-1]
    rows = 1
    for s in lead_shape:
        rows *= int(s)
    x2d = x.reshape(rows, d)

    use_bias = offset is not None
    scale2d = scale.reshape(1, d)
    offset2d = offset.reshape(1, d) if use_bias else None

    if 0.0 <= p <= 1.0:
        partial_size = int(d * p)
        if partial_size == 0:
            raise ValueError("partial RMSNorm with int(d*p)==0 is degenerate "
                             "(d_x**-0.5 is inf); use p<0 to disable instead.")
    else:
        partial_size = None

    num_tc, bf16_vpu = _chip_info()
    low_precision = bool(bf16_vpu and x.dtype == jnp.bfloat16)
    if approx_reciprocal is None:
        # EUP reciprocal is effectively free and its error is below bf16 ulp;
        # keep exact reciprocal for f32 outputs.
        approx_reciprocal = x.dtype != jnp.float32

    itemsize = jnp.dtype(x.dtype).itemsize
    if block_rows is None:
        tm = _pick_tile_rows(rows, d, itemsize, num_tc, target_tile_bytes)
    else:
        tm = max(8, (min(block_rows, _round_up(rows, 8)) // 8) * 8)

    # No padding: Pallas handles the ragged final block (padded reads, masked
    # writes). The per-row reduction keeps padded-row garbage isolated.
    n_steps = pl.cdiv(rows, tm)

    # Honest scoped-VMEM estimate: double-buffered in/out tiles plus ~3 full
    # (tm, d) f32 intermediates for the upcast/square/output path.
    tile_bytes = tm * d * itemsize
    f32_temp_bytes = 3 * tm * d * 4
    needed = 4 * tile_bytes + f32_temp_bytes + 8 * d * 4 + (8 << 20)
    vmem_limit = int(max(needed, 32 << 20))

    kernel = functools.partial(
        _rmsnorm_kernel,
        eps=float(eps),
        d=d,
        partial_size=partial_size,
        use_bias=use_bias,
        approx_reciprocal=approx_reciprocal,
        low_precision=low_precision,
    )

    in_specs = [
        pl.BlockSpec((tm, d), lambda i: (i, 0)),   # x rows tile
        pl.BlockSpec((1, d), lambda i: (0, 0)),    # scale (broadcast)
    ]
    args = [x2d, scale2d]
    if use_bias:
        in_specs.append(pl.BlockSpec((1, d), lambda i: (0, 0)))  # offset
        args.append(offset2d)

    out2d = pl.pallas_call(
        kernel,
        out_shape=jax.ShapeDtypeStruct((rows, d), x.dtype),
        grid_spec=pltpu.PrefetchScalarGridSpec(
            num_scalar_prefetch=0,
            grid=(n_steps,),
            in_specs=in_specs,
            out_specs=pl.BlockSpec((tm, d), lambda i: (i, 0)),
        ),
        compiler_params=pltpu.CompilerParams(
            dimension_semantics=("parallel",),
            vmem_limit_bytes=vmem_limit,
        ),
    )(*args)

    return out2d.reshape(*lead_shape, d)


# --------------------------------------------------------------------------
# Pure-JAX reference mirroring the PyTorch module exactly.
# --------------------------------------------------------------------------
def rmsnorm_ref(x, scale, offset=None, *, p=-1.0, eps=1e-8):
    d = x.shape[-1]
    if p < 0.0 or p > 1.0:
        norm_x = jnp.linalg.norm(x, ord=2, axis=-1, keepdims=True)
        d_x = d
    else:
        partial_size = int(d * p)
        partial_x = x[..., :partial_size]
        norm_x = jnp.linalg.norm(partial_x, ord=2, axis=-1, keepdims=True)
        d_x = partial_size
    rms_x = norm_x * d_x ** (-1.0 / 2)
    x_normed = x / (rms_x + eps)
    out = scale * x_normed
    if offset is not None:
        out = out + offset
    return out


if __name__ == "__main__":
    key = jax.random.PRNGKey(0)

    # Shapes implied by the module: (batch, seq, hidden), normalize over hidden.
    batch, seq, d = 2, 8, 32
    kx, k2 = jax.random.split(key)
    x = jax.random.normal(kx, (batch, seq, d), dtype=jnp.float32)

    # nn.Parameter(torch.ones(d)); bias=False in the default config.
    scale = jnp.ones((d,), dtype=jnp.float32)

    out = jax.block_until_ready(rmsnorm(x, scale, p=-1.0, eps=1e-8))
    ref = rmsnorm_ref(x, scale, p=-1.0, eps=1e-8)
    assert out.shape == x.shape and out.dtype == x.dtype
    assert jnp.allclose(out, ref, atol=1e-5, rtol=1e-5), "full-norm mismatch"

    # Partial RMSNorm + bias + non-divisible row count (exercises lane-mask
    # path, bias path, and Pallas's ragged final block instead of jnp.pad).
    x2 = jax.random.normal(k2, (3, 5, d), dtype=jnp.float32)
    scale2 = jnp.full((d,), 0.5, dtype=jnp.float32)
    offset2 = jnp.full((d,), 0.1, dtype=jnp.float32)
    out2 = jax.block_until_ready(rmsnorm(x2, scale2, offset2, p=0.5, eps=1e-8))
    ref2 = rmsnorm_ref(x2, scale2, offset2, p=0.5, eps=1e-8)
    assert jnp.allclose(out2, ref2, atol=1e-5, rtol=1e-5), "partial-norm mismatch"

    # bf16 path (low-precision elementwise on v6e/v7x, f32 path elsewhere).
    xb = x.astype(jnp.bfloat16)
    outb = jax.block_until_ready(rmsnorm(xb, scale.astype(jnp.bfloat16)))
    refb = rmsnorm_ref(xb.astype(jnp.float32), scale)
    assert outb.dtype == jnp.bfloat16
    assert jnp.allclose(outb.astype(jnp.float32), refb, atol=3e-2, rtol=3e-2), \
        "bf16 mismatch"

    print("KERNEL_OK")
</pallas_src>

<mosaic_0001>
module attributes {stable_mosaic.version = 11 : i64} {
  func.func @_rmsnorm_kernel(%arg0: i32, %arg1: memref<16x32xf32, #tpu.memory_space<vmem>>, %arg2: memref<1x32xf32, #tpu.memory_space<vmem>>, %arg3: memref<16x32xf32, #tpu.memory_space<vmem>>) attributes {dimension_semantics = [#tpu.dimension_semantics<parallel>], iteration_bounds = array<i64: 1>, scalar_prefetch = 0 : i64, scratch_operands = 0 : i64, tpu.core_type = #tpu.core_type<tc>, window_params = [{transform_indices = @transform_0, window_bounds = array<i64: 16, 32>}, {pipeline_mode = #tpu.pipeline_mode<synchronous>, transform_indices = @transform_1, window_bounds = array<i64: 1, 32>}, {transform_indices = @transform_2, window_bounds = array<i64: 16, 32>}]} {
    %c0 = arith.constant 0 : index
    %c0_0 = arith.constant 0 : index
    %0 = vector.load %arg1[%c0, %c0_0] : memref<16x32xf32, #tpu.memory_space<vmem>>, vector<16x32xf32>
    %1 = arith.mulf %0, %0 : vector<16x32xf32>
    %cst = arith.constant dense<0.000000e+00> : vector<16xf32>
    %2 = vector.multi_reduction <add>, %1, %cst [1] : vector<16x32xf32> to vector<16xf32>
    %3 = vector.shape_cast %2 : vector<16xf32> to vector<16x1xf32>
    %4 = math.sqrt %3 : vector<16x1xf32>
    %cst_1 = arith.constant 0.176776692 : f32
    %5 = vector.broadcast %cst_1 : f32 to vector<16x1xf32>
    %6 = arith.mulf %4, %5 : vector<16x1xf32>
    %cst_2 = arith.constant 9.99999993E-9 : f32
    %7 = vector.broadcast %cst_2 : f32 to vector<16x1xf32>
    %8 = arith.addf %6, %7 : vector<16x1xf32>
    %9 = tpu.reciprocal %8 : vector<16x1xf32> -> vector<16x1xf32>
    %10 = vector.broadcast %9 : vector<16x1xf32> to vector<16x32xf32>
    %11 = arith.mulf %0, %10 : vector<16x32xf32>
    %c0_3 = arith.constant 0 : index
    %c0_4 = arith.constant 0 : index
    %12 = vector.load %arg2[%c0_3, %c0_4] : memref<1x32xf32, #tpu.memory_space<vmem>>, vector<1x32xf32>
    %13 = vector.broadcast %12 : vector<1x32xf32> to vector<16x32xf32>
    %14 = arith.mulf %11, %13 : vector<16x32xf32>
    %c0_5 = arith.constant 0 : index
    %c0_6 = arith.constant 0 : index
    %15 = vector.load %arg3[%c0_5, %c0_6] : memref<16x32xf32, #tpu.memory_space<vmem>>, vector<16x32xf32>
    tpu.vector_store %arg3[%c0_5, %c0_6], %14 {strides = array<i32>} : memref<16x32xf32, #tpu.memory_space<vmem>>, vector<16x32xf32>,
    return
  }
  func.func @transform_0(%arg0: i32) -> (i32, i32) {
    %c0_i32 = arith.constant 0 : i32
    %c0_i32_0 = arith.constant 0 : i32
    return %arg0, %c0_i32 : i32, i32
  }
  func.func @transform_1(%arg0: i32) -> (i32, i32) {
    %c0_i32 = arith.constant 0 : i32
    %c0_i32_0 = arith.constant 0 : i32
    %c0_i32_1 = arith.constant 0 : i32
    return %c0_i32, %c0_i32_0 : i32, i32
  }
  func.func @transform_2(%arg0: i32) -> (i32, i32) {
    %c0_i32 = arith.constant 0 : i32
    %c0_i32_0 = arith.constant 0 : i32
    return %arg0, %c0_i32 : i32, i32
  }
}

</mosaic_0001>

<bundles_post_ra>
// kernel: tpu_custom_call.1
= control target key start
LH: loop header
LB: loop body
LE: loop exit
PB: predicated region body
PF: predicated region fallthrough
CT: control target
= control target key end

     0   :  { %7 = vsyncpa [#allocation3], 0  ;;  %s182_s0 = inlined_call_operand.hbm [shape: f32[16,32], index: 0, kind: input, shape index: {}]   ;;  %s183_s1 = inlined_call_operand.vmem [shape: f32[1,32], index: 1, kind: input, shape index: {}]   ;;  %s184_s2 = inlined_call_operand.hbm [shape: f32[16,32], index: 2, kind: output, shape index: {}]  }
   0x1   :  { %8 = vsyncpa [#allocation4], 0  ;;  %s144_s9 = smov [#allocation2]  }
   0x2   :  { %s14_s10 = sshll.u32 %s144_s9, 4  ;;  %s15_s10 = int_to_ptr.vmem [resolvable:$true] %s14_s10 }
   0x3   :  { %s108_s11 = scalar_lea.vmem %s15_s10, 256  ;;  %p113_p1 = scmp.lt.s32.totalorder %s15_s10, %s15_s10 }
   0x4   :  { %p109_p0 = scmp.ne.s32.totalorder %s15_s10, %s108_s11  ;;  %p114_p2 = scmp.lt.s32.totalorder %s108_s11, %s108_s11 }
   0x6   :  { %p115_p3 = por %p114_p2, %p113_p1 }
   0x8   :  { %p116_p4 = pnand %p115_p3, %p109_p0 }
   0xa   :  { %119 = shalt.err (!%p116_p4)
}
   0xb   :  { %s145_s12 = smov 128   ;;  %s146_s13 = smov 8  }
   0xc   :  { %20 = dma.hbm_to_vmem [thread:$0]  %s182_s0, 256, %s15_s10, [#allocation3], %s145_s12, %s145_s12, %s146_s13  }
   0xd   :  { %140 = dma.done.wait [#allocation3], 256  }
   0xe   :  { %141 = vsyncadd [#allocation3], 4294967040  ;;  %v26_v0 = vld [vmem:[#allocation2] sm:$0xff]  ;;  %vm30_vm0 = vcmask 261120   ;;  %v27_v1 = vld [vmem:[#allocation2 + $0x8] sm:$0xff]  ;;  %s147_s17 = smov [#allocation5]  }
   0xf   :  { %v28_v2 = vmul.f32 %v26_v0, %v26_v0  ;;  %v29_v3 = vmul.f32 %v27_v1, %v27_v1  ;;  %v87_v23 = vld [vmem:[%s183_s1] ss:$0 sm:$0xff]  ;;  %s75_s18 = sshll.u32 %s147_s17, 4  ;;  %s76_s18 = int_to_ptr.vmem [resolvable:$true] %s75_s18 }
  0x10   :  { %s120_s19 = scalar_lea.vmem %s76_s18, 256  ;;  %p125_p6 = scmp.lt.s32.totalorder %s76_s18, %s76_s18 }
  0x11   :  { %v31_v4 = vsel %vm30_vm0, %v28_v2, 0.0  ;;  %v34_v5 = vsel %vm30_vm0, %v29_v3, 0.0  ;;  %p121_p5 = scmp.ne.s32.totalorder %s76_s18, %s120_s19  ;;  %p126_p7 = scmp.lt.s32.totalorder %s120_s19, %s120_s19 }
  0x12   :  { %32 = vadd.xlane.f32.xlu0 %v31_v4 }
  0x13   :  { %p127_p8 = por %p126_p7, %p125_p6 }
  0x15   :  { %p128_p9 = pnand %p127_p8, %p121_p5 }
  0x16   :  { %35 = vadd.xlane.f32.xlu0 %v34_v5 }
  0x9b   :  { %v33_v6 = vpop.xlane.xlu0 %32 }
  0x9c   :  { %92 = vrsqrt.f32 %v33_v6  ;;  %vm39_vm1 = vcmp.eq.f32.partialorder %v33_v6, inf  ;;  %v42_v10 = vand.u32 2147483648, %v33_v6  ;;  %vm41_vm2 = vcmp.eq.f32.partialorder %v33_v6, 0.0 }
  0x9f   :  { %v36_v7 = vpop.xlane.xlu0 %35 }
  0xa0   :  { %94 = vrsqrt.f32 %v36_v7  ;;  %vm46_vm3 = vcmp.eq.f32.partialorder %v36_v7, inf  ;;  %v49_v16 = vand.u32 2147483648, %v36_v7  ;;  %vm48_vm4 = vcmp.eq.f32.partialorder %v36_v7, 0.0 }
  0xa9   :  { %v93_v8 = vpop.eup %92 }
  0xaa   :  { %v38_v9 = vmul.f32 %v93_v8, %v33_v6 }
  0xac   :  { %v40_v11 = vsel %vm39_vm1, %v33_v6, %v38_v9 }
  0xad   :  { %v95_v12 = vpop.eup %94  ;;  %v43_v13 = vsel %vm41_vm2, %v42_v10, %v40_v11 }
  0xae   :  { %v51_v14 = vmul.f32 0.17677669, %v43_v13  ;;  %v45_v15 = vmul.f32 %v95_v12, %v36_v7 }
  0xb0   :  { %v53_v17 = vadd.f32 1e-08, %v51_v14  ;;  %v47_v18 = vsel %vm46_vm3, %v36_v7, %v45_v15 }
  0xb1   :  { %v50_v19 = vsel %vm48_vm4, %v49_v16, %v47_v18 }
  0xb2   :  { %96 = vrcp.f32 %v53_v17  ;;  %v52_v20 = vmul.f32 0.17677669, %v50_v19 }
  0xb4   :  { %v54_v21 = vadd.f32 1e-08, %v52_v20 }
  0xb6   :  { %98 = vrcp.f32 %v54_v21 }
  0xbf   :  { %v97_v22 = vpop.eup %96 }
  0xc0   :  { %v57_v24 = vmul.f32 %v97_v22, %v26_v0 }
  0xc2   :  { %v66_v25 = vmul.f32 %v87_v23, %v57_v24 }
  0xc3   :  { %v99_v26 = vpop.eup %98 }
  0xc4   :  { %v58_v27 = vmul.f32 %v99_v26, %v27_v1  ;;  %68 = vst.msk [vmem:[#allocation5] sm:$0xff] %vm30_vm0, %v66_v25 }
  0xc6   :  { %v67_v28 = vmul.f32 %v87_v23, %v58_v27 }
  0xc8   :  { %69 = vst.msk [vmem:[#allocation5 + $0x8] sm:$0xff] %vm30_vm0, %v67_v28 }
  0xc9   :  { %131 = shalt.err (!%p128_p9)
}
  0xca   :  { %81 = dma.vmem_to_hbm [thread:$0]  %s76_s18, 256, %s184_s2, [#allocation4], %s145_s12, %s145_s12, %s146_s13  }
  0xcb   :  { %142 = dma.done.wait [#allocation4], 256  }
  0xcc   :  { %143 = vsyncadd [#allocation4], 4294967040 }
  0xcd   :  { %85 = vsyncpa [#allocation3], 1 }
  0xce   :  { %86 = vsyncpa [#allocation4], 1 }

</bundles_post_ra>
